<compile_context>
chip_gen: v7x
topology: tpu7x:2x2x1
jax: 0.10.0
libtpu: 0.0.40
codegen_flags: <defaults>
</compile_context>

<pallas_src>
import functools

import numpy as np
import jax
import jax.numpy as jnp
from jax.experimental import pallas as pl
from jax.experimental.pallas import tpu as pltpu


def _fourier_block_kernel(x_ref, g_ref, o_ref, *, tb, h, fp, l):
    x = x_ref[...]                                                   # (TB*H, L)

    # One fused projection matmul: P = x @ G, f32 accumulation on the MXU.
    p = jnp.dot(x, g_ref[...], preferred_element_type=jnp.float32)  # (TB*H, 6Fp+L)
    p = p.reshape(tb, h, 6 * fp + l)

    q_cat = p[:, :, : 2 * fp]            # [qr | qi]
    k_cat1 = p[:, :, 2 * fp: 4 * fp]     # [kr | -ki]
    k_cat2 = p[:, :, 4 * fp: 6 * fp]     # [ki |  kr]
    v_time = p[:, :, 6 * fp:]            # irfft(v_ft)  (TB, H, L)

    # qk = q @ k^T (plain transpose, NOT conjugate): real/imag parts in two
    # batched matmuls thanks to the concatenated k slabs baked into G.
    qkr = jnp.einsum('bqf,bkf->bqk', q_cat, k_cat1,
                     preferred_element_type=jnp.float32)             # (TB, H, H)
    qki = jnp.einsum('bqf,bkf->bqk', q_cat, k_cat2,
                     preferred_element_type=jnp.float32)

    # softmax(|qk|, axis=-1) in f32; the divide goes to the EUP as a reciprocal.
    mag = jnp.sqrt(qkr * qkr + qki * qki)
    m = jnp.max(mag, axis=-1, keepdims=True)
    e = jnp.exp(mag - m)
    attn = e * pl.reciprocal(jnp.sum(e, axis=-1, keepdims=True), approx=True)

    # out = attn @ irfft(v_ft) == irfft(attn @ v_ft) because attn is real.
    out = jnp.einsum('bqk,bkl->bql', attn, v_time,
                     preferred_element_type=jnp.float32)             # (TB, H, L)
    o_ref[...] = out.reshape(tb * h, l).astype(o_ref.dtype)


def _build_folded_matrix(w_k, w_q, w_v, L):
    """Fold rfft, the complex k/q/v projections and irfft into one real matrix G.

    Returns (G, Fp) with G of shape (L, 6*Fp + L), columns ordered
    [qr | qi | kr | -ki | ki | kr | Mv], every F-wide block zero-padded to Fp.
    """
    F = L // 2 + 1
    Fp = ((F + 127) // 128) * 128

    n = np.arange(L, dtype=np.float64)[:, None]
    k = np.arange(F, dtype=np.float64)[None, :]
    ang = 2.0 * np.pi * n * k / L
    Cr = np.cos(ang)                      # rfft:  x_ft = x @ (Cr + i*Ci)
    Ci = -np.sin(ang)                     # (L, F)

    # irfft(z, n=L)[t] = sum_k (c_k / L) * Re(z_k * e^{+2pi i k t / L}),
    # c_0 = c_Nyquist = 1, else 2 (imag part of DC / Nyquist bins ignored).
    c = np.full((F,), 2.0)
    c[0] = 1.0
    if L % 2 == 0:
        c[-1] = 1.0
    ang2 = 2.0 * np.pi * np.arange(F, dtype=np.float64)[:, None] * \
        np.arange(L, dtype=np.float64)[None, :] / L
    Dr = c[:, None] * np.cos(ang2) / L    # (F, L)
    Di = -c[:, None] * np.sin(ang2) / L

    def eff(w):
        # einsum 'bhi,pio->bho' sums over p as well as i -> fold p into weight.
        w_eff = np.asarray(jnp.sum(w, axis=0))
        return np.real(w_eff).astype(np.float64), np.imag(w_eff).astype(np.float64)

    def proj(wr, wi):
        # x @ (Cr + iCi) @ (wr + i wi)  ->  real part Er, imag part Ei  (L, F)
        return Cr @ wr - Ci @ wi, Cr @ wi + Ci @ wr

    Ekr, Eki = proj(*eff(w_k))
    Eqr, Eqi = proj(*eff(w_q))
    Evr, Evi = proj(*eff(w_v))
    Mv = Evr @ Dr + Evi @ Di              # irfft(v projection of rfft(x)): (L, L)

    def pad(a):                           # (L, F) -> (L, Fp), zero-padded lanes
        out = np.zeros((L, Fp), np.float64)
        out[:, :F] = a
        return out

    G = np.concatenate(
        [pad(Eqr), pad(Eqi),              # q_cat  = [qr | qi]
         pad(Ekr), -pad(Eki),             # k_cat1 = [kr | -ki]  -> qk real part
         pad(Eki), pad(Ekr),              # k_cat2 = [ki |  kr]  -> qk imag part
         Mv],
        axis=1)                           # (L, 6Fp + L)
    return G.astype(np.float32), Fp


def _default_block_b(B, H):
    """Batch elements per grid step: ~256 matmul rows, >=2 grid steps when possible."""
    target = max(1, 256 // max(H, 1))
    tb = min(B, target)
    if B >= 2:
        tb = min(tb, max(1, B // 2))
    while B % tb:
        tb -= 1
    if (tb * H) % 8 and tb != B:     # keep the sublane block dim legal (mult of 8 or full)
        tb = B
    return tb


def fourier_block_pallas(x, w_k, w_q, w_v, *, block_b=None, matmul_dtype=jnp.bfloat16):
    B, H, L = x.shape
    F = L // 2 + 1
    assert w_k.shape == (3, F, F) and w_q.shape == (3, F, F) and w_v.shape == (3, F, F)

    G_np, Fp = _build_folded_matrix(w_k, w_q, w_v, L)
    width = 6 * Fp + L

    if block_b is None:
        block_b = _default_block_b(B, H)
    assert B % block_b == 0
    tbh = block_b * H

    G = jnp.asarray(G_np, matmul_dtype)                      # (L, 6Fp + L)
    x2 = x.reshape(B * H, L).astype(matmul_dtype)            # lane-dense (B*H, L) slab

    kernel = functools.partial(_fourier_block_kernel, tb=block_b, h=H, fp=Fp, l=L)

    itemsize = np.dtype(matmul_dtype).itemsize
    flops = (2 * B * H * L * width          # P = x @ G
             + 8 * B * H * H * Fp           # qk real/imag batched matmuls
             + 2 * B * H * H * L)           # attn @ v_time
    bytes_accessed = (x2.size * itemsize + B * H * L * 4 + G.size * itemsize)
    cost = pl.CostEstimate(flops=int(flops),
                           transcendentals=int(2 * B * H * H + B * H),
                           bytes_accessed=int(bytes_accessed))

    # TODO(synk): for very large L the (L, 6Fp+L) constant should be streamed
    # over a K-tiled grid axis (and a real FFT would beat the O(L^2) DFT fold);
    # at these shapes the double-buffered constant is only a few hundred KiB.

    out = pl.pallas_call(
        kernel,
        out_shape=jax.ShapeDtypeStruct((B * H, L), jnp.float32),
        grid=(B // block_b,),
        in_specs=[
            pl.BlockSpec((tbh, L), lambda i: (i, 0)),        # x slab (TB*H, L)
            pl.BlockSpec((L, width), lambda i: (0, 0)),      # folded constant G
        ],
        out_specs=pl.BlockSpec((tbh, L), lambda i: (i, 0)),
        compiler_params=pltpu.CompilerParams(
            dimension_semantics=("parallel",),
            vmem_limit_bytes=32 * 1024 * 1024,
        ),
        cost_estimate=cost,
    )(x2, G)
    return out.reshape(B, H, L)


def fourier_block_ref(x, w_k, w_q, w_v):
    """Pure-JAX mirror of the torch forward (verification only)."""
    x_ft = jnp.fft.rfft(x.astype(jnp.float32), axis=2)
    kx = jnp.einsum('bhi,pio->bho', x_ft, w_k)
    qx = jnp.einsum('bhi,pio->bho', x_ft, w_q)
    vx = jnp.einsum('bhi,pio->bho', x_ft, w_v)
    kx_t = jnp.swapaxes(kx, 1, 2)
    qk = jnp.matmul(qx, kx_t)
    a = jax.nn.softmax(jnp.abs(qk), axis=-1).astype(jnp.complex64)
    y = jnp.matmul(a, vx)
    return jnp.fft.irfft(y, n=x.shape[-1], axis=-1)


if __name__ == "__main__":
    B, H, L = 8, 4, 16
    FOU_LEN = L // 2 + 1              # fou_len = 9, must equal rfft output length
    scale = 1.0 / (FOU_LEN * FOU_LEN)

    key = jax.random.PRNGKey(0)
    x = jax.random.normal(key, (B, H, L), dtype=jnp.float32)

    # Module __init__: scale * torch.ones((3, fou_len, fou_len), dtype=cfloat) == scale*(1+0j)
    w_init = scale * jnp.ones((3, FOU_LEN, FOU_LEN), dtype=jnp.complex64)
    w_k, w_q, w_v = w_init, w_init, w_init
    # (weight1 exists in __init__ but is unused in forward.)

    y_ref = fourier_block_ref(x, w_k, w_q, w_v)

    # f32 matmul path: tight structural/numerical check.
    y_f32 = jax.block_until_ready(
        fourier_block_pallas(x, w_k, w_q, w_v, matmul_dtype=jnp.float32))
    np.testing.assert_allclose(np.asarray(y_f32), np.asarray(y_ref), rtol=1e-3, atol=1e-3)

    # Default bf16 matmul path (fast path on v6e/v7x): the folded constant and
    # x are rounded to bfloat16, so validate with a correspondingly looser tol.
    y_bf16 = jax.block_until_ready(fourier_block_pallas(x, w_k, w_q, w_v))
    np.testing.assert_allclose(np.asarray(y_bf16), np.asarray(y_ref), rtol=1e-1, atol=1e-1)

    print("KERNEL_OK")
</pallas_src>

<mosaic_0001>
module attributes {stable_mosaic.version = 11 : i64} {
  func.func @_fourier_block_kernel(%arg0: i32, %arg1: memref<16x16xf32, #tpu.memory_space<vmem>>, %arg2: memref<16x784xf32, #tpu.memory_space<vmem>>, %arg3: memref<16x16xf32, #tpu.memory_space<vmem>>) attributes {dimension_semantics = [#tpu.dimension_semantics<parallel>], iteration_bounds = array<i64: 2>, scalar_prefetch = 0 : i64, scratch_operands = 0 : i64, tpu.core_type = #tpu.core_type<tc>, window_params = [{transform_indices = @transform_0, window_bounds = array<i64: 16, 16>}, {pipeline_mode = #tpu.pipeline_mode<synchronous>, transform_indices = @transform_1, window_bounds = array<i64: 16, 784>}, {transform_indices = @transform_2, window_bounds = array<i64: 16, 16>}]} {
    %c0 = arith.constant 0 : index
    %c0_0 = arith.constant 0 : index
    %0 = vector.load %arg1[%c0, %c0_0] : memref<16x16xf32, #tpu.memory_space<vmem>>, vector<16x16xf32>
    %c0_1 = arith.constant 0 : index
    %c0_2 = arith.constant 0 : index
    %1 = vector.load %arg2[%c0_1, %c0_2] : memref<16x784xf32, #tpu.memory_space<vmem>>, vector<16x784xf32>
    %cst = arith.constant dense<0.000000e+00> : vector<16x784xf32>
    %2 = tpu.matmul %0, %1, %cst {dimension_numbers = #tpu.dot_dimension_numbers<[1], [0], [0], [1], [0, 0, 1, 1], [], []>} : vector<16x16xf32>, vector<16x784xf32>, vector<16x784xf32> -> vector<16x784xf32>
    %3 = vector.shape_cast %2 : vector<16x784xf32> to vector<4x4x784xf32>
    %4 = vector.extract_strided_slice %3 {offsets = [0, 0, 0], sizes = [4, 4, 256], strides = [1, 1, 1]} : vector<4x4x784xf32> to vector<4x4x256xf32>
    %5 = vector.extract_strided_slice %3 {offsets = [0, 0, 256], sizes = [4, 4, 256], strides = [1, 1, 1]} : vector<4x4x784xf32> to vector<4x4x256xf32>
    %6 = vector.extract_strided_slice %3 {offsets = [0, 0, 512], sizes = [4, 4, 256], strides = [1, 1, 1]} : vector<4x4x784xf32> to vector<4x4x256xf32>
    %7 = vector.extract_strided_slice %3 {offsets = [0, 0, 768], sizes = [4, 4, 16], strides = [1, 1, 1]} : vector<4x4x784xf32> to vector<4x4x16xf32>
    "tpu.trace_start"() <{level = 10 : i32, message = "bqf,bkf->bqk"}> : () -> ()
    %cst_3 = arith.constant dense<0.000000e+00> : vector<4x4x4xf32>
    %8 = tpu.matmul %4, %5, %cst_3 {dimension_numbers = #tpu.dot_dimension_numbers<[2], [2], [1], [1], [0, 0, 0, 1, 1, 1], [0], [0]>} : vector<4x4x256xf32>, vector<4x4x256xf32>, vector<4x4x4xf32> -> vector<4x4x4xf32>
    %cst_4 = arith.constant dense<0.000000e+00> : vector<4x4x4xf32>
    %9 = tpu.matmul %4, %6, %cst_4 {dimension_numbers = #tpu.dot_dimension_numbers<[2], [2], [1], [1], [0, 0, 0, 1, 1, 1], [0], [0]>} : vector<4x4x256xf32>, vector<4x4x256xf32>, vector<4x4x4xf32> -> vector<4x4x4xf32>
    "tpu.trace_stop"() : () -> ()
    %10 = arith.mulf %8, %8 : vector<4x4x4xf32>
    %11 = arith.mulf %9, %9 : vector<4x4x4xf32>
    %12 = arith.addf %10, %11 : vector<4x4x4xf32>
    %13 = math.sqrt %12 : vector<4x4x4xf32>
    %cst_5 = arith.constant dense<0xFF800000> : vector<4x4xf32>
    %14 = vector.multi_reduction <maximumf>, %13, %cst_5 [2] : vector<4x4x4xf32> to vector<4x4xf32>
    %15 = vector.shape_cast %14 : vector<4x4xf32> to vector<4x4x1xf32>
    %16 = vector.broadcast %15 : vector<4x4x1xf32> to vector<4x4x4xf32>
    %17 = arith.subf %13, %16 : vector<4x4x4xf32>
    %18 = math.exp %17 : vector<4x4x4xf32>
    %cst_6 = arith.constant dense<0.000000e+00> : vector<4x4xf32>
    %19 = vector.multi_reduction <add>, %18, %cst_6 [2] : vector<4x4x4xf32> to vector<4x4xf32>
    %20 = vector.shape_cast %19 : vector<4x4xf32> to vector<4x4x1xf32>
    %21 = tpu.reciprocal %20 {approx = true} : vector<4x4x1xf32> -> vector<4x4x1xf32>
    %22 = vector.broadcast %21 : vector<4x4x1xf32> to vector<4x4x4xf32>
    %23 = arith.mulf %18, %22 : vector<4x4x4xf32>
    "tpu.trace_start"() <{level = 10 : i32, message = "bqk,bkl->bql"}> : () -> ()
    %cst_7 = arith.constant dense<0.000000e+00> : vector<4x4x16xf32>
    %24 = tpu.matmul %23, %7, %cst_7 {dimension_numbers = #tpu.dot_dimension_numbers<[2], [1], [1], [2], [0, 0, 0, 1, 1, 2], [0], [0]>} : vector<4x4x4xf32>, vector<4x4x16xf32>, vector<4x4x16xf32> -> vector<4x4x16xf32>
    "tpu.trace_stop"() : () -> ()
    %25 = vector.shape_cast %24 : vector<4x4x16xf32> to vector<16x16xf32>
    %c0_8 = arith.constant 0 : index
    %c0_9 = arith.constant 0 : index
    %26 = vector.load %arg3[%c0_8, %c0_9] : memref<16x16xf32, #tpu.memory_space<vmem>>, vector<16x16xf32>
    tpu.vector_store %arg3[%c0_8, %c0_9], %25 {strides = array<i32>} : memref<16x16xf32, #tpu.memory_space<vmem>>, vector<16x16xf32>,
    return
  }
  func.func @transform_0(%arg0: i32) -> (i32, i32) {
    %c0_i32 = arith.constant 0 : i32
    %c0_i32_0 = arith.constant 0 : i32
    return %arg0, %c0_i32 : i32, i32
  }
  func.func @transform_1(%arg0: i32) -> (i32, i32) {
    %c0_i32 = arith.constant 0 : i32
    %c0_i32_0 = arith.constant 0 : i32
    %c0_i32_1 = arith.constant 0 : i32
    return %c0_i32, %c0_i32_0 : i32, i32
  }
  func.func @transform_2(%arg0: i32) -> (i32, i32) {
    %c0_i32 = arith.constant 0 : i32
    %c0_i32_0 = arith.constant 0 : i32
    return %arg0, %c0_i32 : i32, i32
  }
}

</mosaic_0001>

<bundles_post_ra>
// kernel: tpu_custom_call.1
= control target key start
LH: loop header
LB: loop body
LE: loop exit
PB: predicated region body
PF: predicated region fallthrough
CT: control target
= control target key end

     0   :  { %7 = vsyncpa [#allocation3], 0  ;;  %s1783_s9 = smov 0   ;;  %s1898_s0 = inlined_call_operand.vmem [shape: f32[32,16], index: 0, kind: input, shape index: {}]   ;;  %s1899_s1 = inlined_call_operand.hbm [shape: f32[16,784], index: 1, kind: input, shape index: {}]   ;;  %s1900_s2 = inlined_call_operand.vmem [shape: f32[32,16], index: 2, kind: output, shape index: {}]  }
   0x1 LB: > { %s1580_s10 = sadd.s32 4294967295, %s1761_s9   ;;  %p1582_p0 = scmp.ge.s32.totalorder %s1761_s9, 1  ;;  %s1761_s9 = sphi %s1783_s9, %s13_s9  }
   0x2   : > { %p91_p1 = scmp.lt.s32.totalorder %s1761_s9, 3  ;;  %s1763_s11 = smov [#allocation2]  }
   0x3   : > { %s103_s12 = sshll.u32 %s1763_s11, 4  ;;  %p1797_p3 = scmp.eq.s32.totalorder %s1580_s10, 0  ;;  %s104_s12 = int_to_ptr.vmem [resolvable:$true] %s103_s12 }
   0x4   : > { %p1791_p2 = pnand %p1582_p0, %p91_p1  ;;  %s1723_s18 = scalar_lea.hbm %s1899_s1, 1792 }
   0x5   : > { %s1905_s14 = scalar_select %p1797_p3, 1, 0 }
   0x6   : > { %s1904_s13 = scalar_select %p1791_p2, 1, 0 }
   0x7   : > { %p1680_p4 = pneg %p1791_p2  ;;  %p1724_p6 = scmp.ne.s32.totalorder %s1899_s1, %s1723_s18 }
   0x8   : > { %p1730_p10 = scmp.lt.u32.totalorder %s1723_s18, %s1899_s1 }
   0x9   : > { %p1805_p5 = pnand %p1797_p3, %p1680_p4 }
   0xb   : > { %p1725_p7 = pneg %p1805_p5 }
   0xd   : > { %p1726_p8 = pnand %p1725_p7, %p1724_p6 }
   0xf   : > { %p1727_p9 = pneg %p1726_p8 }
  0x11   : > { %p1732_p11 = pnand %p1730_p10, %p1727_p9 }
  0x13   : > { %1735 = shalt.err (!%p1732_p11)
}
  0x14   : > { %s1736_s23 = scalar_lea.vmem %s104_s12, 1792  ;;  %p1744_p1 = scmp.lt.s32.totalorder %s104_s12, %s104_s12 }
  0x15   : > { %p1737_p12 = scmp.ne.s32.totalorder %s104_s12, %s1736_s23  ;;  %p1745_p4 = scmp.lt.s32.totalorder %s1736_s23, %s1736_s23 }
  0x17   : > { %p1739_p13 = pnand %p1737_p12, %p1725_p7  ;;  %p1746_p3 = por %p1745_p4, %p1744_p1 }
  0x19   : > { %p1740_p0 = pneg %p1739_p13 }
  0x1b   : > { %p1747_p2 = pnand %p1746_p3, %p1740_p0 }
  0x1d   : > { %1750 = shalt.err (!%p1747_p2)
}
  0x1e   : > { %s1764_s24 = smov 896   ;;  %s1765_s25 = smov 56  }
  0x1f   : > { %1683 = dma.hbm_to_vmem [thread:$0]  (!%p1805_p5), %s1899_s1, 1792, %s104_s12, [#allocation3], %s1764_s24, %s1764_s24, %s1765_s25  }
  0x20   : > { %p1907_p6 = scmp.ne.s32.totalorder %s1904_s13, 0 }
  0x21   : > { %p1908_p8 = scmp.ne.s32.totalorder (!%p1907_p6), %s1905_s14, 0 }
  0x22   : > { %128 = sbr.rel (%p1907_p6) target bundleno = 1047 (0x417), region = 28 }
  0x29   : > { %1756 = dma.done.wait (%p1908_p8), [#allocation3], 1792  }
  0x2a   : > { %1758 = vsyncadd (%p1908_p8), [#allocation3], 4294965504  ;;  %s1587_s28 = sshll.u32 %s1580_s10, 1  ;;  %v1766_v0 = vmov 0.0   ;;  %v165_v1 = vld [vmem:[#allocation2 + $0x8] sm:$0xff]  ;;  %v172_v2 = vld [vmem:[#allocation2 + $0x40] sm:$0xff] }
  0x2b   : > { %249 = vmatprep.mubr.f32.mxu0 %v1766_v0  ;;  %326 = vmatprep.mubr.f32.mxu1 %v1766_v0  ;;  %p151_p2 = scmp.lt.s32.totalorder %s1587_s28, 3  ;;  %v167_v3 = vld [vmem:[#allocation2 + $0x18] sm:$0xff]  ;;  %v1660_v4 = vpack.c.bf16 %v172_v2, %v165_v1  ;;  %v174_v5 = vld [vmem:[#allocation2 + $0x50] sm:$0xff]  ;;  %v164_v6 = vld [vmem:[#allocation2] sm:$0xff]  ;;  %vm178_vm0 = vcmask 130048   ;;  %vm1204_vm1 = vcmask 1043456  }
  0x2c   : > { %v171_v7 = vld [vmem:[#allocation2 + $0x38] sm:$0xff]  ;;  %v1664_v8 = vpack.c.bf16 %v174_v5, %v167_v3  ;;  %v166_v10 = vld [vmem:[#allocation2 + $0x10] sm:$0xff]  ;;  %v173_v11 = vld [vmem:[#allocation2 + $0x48] sm:$0xff]  ;;  %vm1155_vm3 = vcmask 27648   ;;  %vm1767_vm11 = vmmov 0   ;;  %vm1200_vm12 = vcmask 31744  }
  0x2d   : > { %s1910_s28 = smov (!%p151_p2, %s1587_s28), 3  ;;  %v1662_v9 = vpack.c.bf16 %v171_v7, %v164_v6  ;;  %1661 = vmatprep.subr.bf16.mxu0 %v1660_v4  ;;  %v1666_v12 = vpack.c.bf16 %v173_v11, %v166_v10  ;;  %v169_v13 = vld [vmem:[#allocation2 + $0x28] sm:$0xff]  ;;  %v176_v14 = vld [vmem:[#allocation2 + $0x60] sm:$0xff]  ;;  %v175_v18 = vld [vmem:[#allocation2 + $0x58] sm:$0xff] }
  0x2e   : > { %s1588_s29 = sshll.u32 %s1910_s28, 3  ;;  %v168_v15 = vld [vmem:[#allocation2 + $0x20] sm:$0xff]  ;;  %1665 = vmatprep.subr.bf16.mxu1 %v1664_v8  ;;  %v1668_v17 = vpack.c.bf16 %v176_v14, %v169_v13  ;;  %v170_v19 = vld [vmem:[#allocation2 + $0x30] sm:$0xff]  ;;  %v177_v21 = vld [vmem:[#allocation2 + $0x68] sm:$0xff] }
  0x2f   : > { %s154_s4 = scalar_lea.vmem %s1898_s0, %s1588_s29  ;;  %1663 = vmatpush1.bf16.msra.mxu0 %v1662_v9  ;;  %1667 = vmatpush1.bf16.msra.mxu1 %v1666_v12  ;;  %v1670_v20 = vpack.c.bf16 %v175_v18, %v168_v15  ;;  %v1672_v22 = vpack.c.bf16 %v177_v21, %v170_v19  ;;  %s160_s7 = scalar_lea.vmem %s1900_s2, %s1588_s29 }
  0x30   : > { %v162_v16 = vld [vmem:[%s154_s4] sm:$0xff]  ;;  %1669 = vmatprep.subr.bf16.mxu0 %v1668_v17  ;;  %v163_v23 = vld [vmem:[%s154_s4 + $0x8] sm:$0xff] }
  0x31   : > { %1673 = vmatprep.subr.bf16.mxu1 %v1672_v22 }
  0x32   : > { %1591 = vmatmul.mubr.msk.f32.vlgmr.msra.gmra.mrb[0].mxu0 %vm178_vm0, %v162_v16  ;;  %1593 = vmatmul.mubr.msk.f32.vlgmr.msra.gmra.mrb[0].mxu1 %vm178_vm0, %v162_v16 }
  0x33   : > { %1671 = vmatpush1.bf16.msra.mxu0 %v1670_v20  ;;  %255 = vmatprep.mubr.f32.mxu0 %v1766_v0 }
  0x34   : > { %332 = vmatprep.mubr.f32.mxu1 %v1766_v0  ;;  %1675 = vmatpush3.bf16.msra.mxu1 %v1672_v22 }
  0x36   : > { %1592 = vmatmul.mubr.msk.f32.gmra.mrb[2].mxu0 %vm178_vm0, %v163_v23  ;;  %1594 = vmatmul.mubr.msk.f32.gmra.mrb[2].mxu1 %vm178_vm0, %v163_v23 }
  0x37   : > { %403 = vmatprep.mubr.f32.mxu0 %v1766_v0  ;;  %1637 = vmatprep.mubr.msk.f32.mxu1 %vm178_vm0, %v162_v16 }
  0x3a   : > { %1595 = vmatmul.mubr.msk.f32.vlgmr.msra.gmra.mrb[4].mxu0 %vm178_vm0, %v162_v16  ;;  %1638 = vmatmul.mubr.msk.f32.vlgmr.msra.gmra.mrb[4].mxu1 %vm178_vm0, %v163_v23 }
  0x3b   : > { %409 = vmatprep.mubr.f32.mxu0 %v1766_v0 }
  0x3e   : > { %1596 = vmatmul.mubr.msk.f32.gmra.mrb[6].mxu0 %vm178_vm0, %v163_v23 }
 0x105   : > { %v251_v24 = vpop.f32.mrb[0].mxu0  ;;  %v328_v25 = vpop.f32.mrb[0].mxu1 }
 0x106   : > { %v253_v26 = vpop.f32.mrb[1].mxu0  ;;  %v330_v29 = vpop.f32.mrb[1].mxu1 }
 0x107   : > { %v505_v27 = vcombine.low %v251_v24, %v253_v26  ;;  %v506_v28 = vcombine.high %v251_v24, %v253_v26  ;;  %v1599_v30 = vcombine.low %v253_v26, %v253_v26  ;;  %v1601_v31 = vcombine.high %v253_v26, %v253_v26 }
 0x108   : > { %v507_v32 = vcombine.low %v328_v25, %v330_v29  ;;  %v508_v33 = vcombine.high %v328_v25, %v330_v29  ;;  %v1600_v34 = vcombine.low %v330_v29, %v330_v29  ;;  %v1602_v35 = vcombine.high %v330_v29, %v330_v29 }
 0x109   : > { %v257_v36 = vpop.f32.mrb[2].mxu0  ;;  %599 = vmatprep.mubr.f32.mxu1 %v1599_v30  ;;  %673 = vmatprep.mubr.f32.mxu0 %v1601_v31  ;;  %v334_v37 = vpop.f32.mrb[2].mxu1 }
 0x10a   : > { %535 = vmatprep.subr.mxu1 %v1600_v34  ;;  %609 = vmatprep.subr.mxu0 %v1602_v35  ;;  %v259_v38 = vpop.f32.mrb[3].mxu0  ;;  %v336_v41 = vpop.f32.mrb[3].mxu1 }
 0x10b   : > { %v512_v39 = vcombine.low %v257_v36, %v259_v38  ;;  %v513_v40 = vcombine.high %v257_v36, %v259_v38  ;;  %536 = vmatpush1.xpose.msra.mxu1 %v507_v32  ;;  %610 = vmatpush1.xpose.msra.mxu0 %v508_v33  ;;  %v1603_v42 = vcombine.low %v259_v38, %v259_v38 }
 0x10c   : > { %v514_v43 = vcombine.low %v334_v37, %v336_v41  ;;  %v515_v44 = vcombine.high %v334_v37, %v336_v41  ;;  %v1604_v45 = vcombine.low %v336_v41, %v336_v41  ;;  %v1606_v46 = vcombine.high %v336_v41, %v336_v41 }
 0x10d   : > { %v405_v47 = vpop.f32.mrb[4].mxu0  ;;  %v1605_v48 = vcombine.high %v259_v38, %v259_v38  ;;  %v1855_v50 = vpop.f32.mrb[4].mxu1 }
 0x10e   : > { %600 = vmatmul.mubr.f32.vlgmr.msra.gmra.mrb[6].mxu1 %v505_v27  ;;  %674 = vmatmul.mubr.f32.vlgmr.msra.gmra.mrb[8].mxu0 %v506_v28  ;;  %v407_v49 = vpop.f32.mrb[5].mxu0  ;;  %v482_v54 = vpop.f32.mrb[5].mxu1 }
 0x10f   : > { %683 = vmatprep.subr.mxu1 %v1604_v45  ;;  %757 = vmatprep.subr.mxu0 %v1606_v46  ;;  %v509_v51 = vcombine.low %v405_v47, %v407_v49  ;;  %v510_v52 = vcombine.high %v405_v47, %v407_v49  ;;  %v1607_v53 = vcombine.low %v407_v49, %v407_v49 }
 0x110   : > { %684 = vmatpush1.xpose.msra.mxu1 %v514_v43  ;;  %747 = vmatprep.mubr.f32.mxu1 %v1603_v42  ;;  %v1608_v55 = vcombine.high %v407_v49, %v407_v49  ;;  %v511_v62 = vcombine.high %v482_v54, %v482_v54 }
 0x111   : > { %758 = vmatpush1.xpose.msra.mxu0 %v515_v44  ;;  %821 = vmatprep.mubr.f32.mxu0 %v1605_v48  ;;  %v411_v56 = vpop.f32.mrb[6].mxu0 }
 0x112   : > { %829 = vmatprep.subr.mxu1 %v1607_v53  ;;  %901 = vmatprep.subr.mxu0 %v1608_v55  ;;  %v413_v57 = vpop.f32.mrb[7].mxu0 }
 0x113   : > { %748 = vmatmul.mubr.f32.vlgmr.msra.gmra.mrb[8].mxu1 %v512_v39  ;;  %v516_v58 = vcombine.low %v411_v56, %v413_v57  ;;  %v517_v59 = vcombine.high %v411_v56, %v413_v57  ;;  %v1609_v60 = vcombine.low %v413_v57, %v413_v57  ;;  %v1610_v61 = vcombine.high %v413_v57, %v413_v57 }
 0x114   : > { %822 = vmatmul.mubr.f32.vlgmr.msra.gmra.mrb[10].mxu0 %v513_v40  ;;  %830 = vmatpush1.xpose.msra.mxu1 %v509_v51 }
 0x115   : > { %893 = vmatprep.mubr.f32.mxu1 %v1599_v30  ;;  %902 = vmatpush1.xpose.msra.mxu0 %v510_v52 }
 0x116   : > { %965 = vmatprep.mubr.f32.mxu0 %v1601_v31  ;;  %973 = vmatprep.subr.mxu1 %v1609_v60 }
 0x117   : > { %894 = vmatmul.mubr.f32.vlgmr.msra.gmra.mrb[10].mxu1 %v505_v27  ;;  %1045 = vmatprep.subr.mxu0 %v1610_v61 }
 0x118   : > { %966 = vmatmul.mubr.f32.vlgmr.msra.gmra.mrb[12].mxu0 %v506_v28  ;;  %974 = vmatpush1.xpose.msra.mxu1 %v516_v58 }
 0x119   : > { %1037 = vmatprep.mubr.f32.mxu1 %v1603_v42  ;;  %1046 = vmatpush1.xpose.msra.mxu0 %v517_v59 }
 0x11a   : > { %1109 = vmatprep.mubr.f32.mxu0 %v1605_v48  ;;  %1640 = vmatprep.subr.mxu1 %v1766_v0 }
 0x11b   : > { %1038 = vmatmul.mubr.f32.vlgmr.msra.gmra.mrb[12].mxu1 %v512_v39  ;;  %1645 = vmatprep.subr.mxu0 %v1766_v0 }
 0x11c   : > { %1110 = vmatmul.mubr.f32.vlgmr.msra.gmra.mrb[14].mxu0 %v513_v40  ;;  %1641 = vmatpush3.msk.msra.mxu1 %vm1204_vm1, %v482_v54 }
 0x11d   : > { %1646 = vmatpush3.msk.msra.mxu0 %vm1204_vm1, %v511_v62  ;;  %1650 = vmatprep.subr.mxu1 %v1766_v0 }
 0x11e   : > { %1655 = vmatprep.subr.mxu0 %v1766_v0  ;;  %1642 = vmatprep.mubr.msk.f32.mxu1 %vm1767_vm11, %v1766_v0 }
 0x11f   : > { %1647 = vmatprep.mubr.msk.f32.mxu0 %vm1767_vm11, %v1766_v0 }
 0x1e1   : > { %v601_v63 = vpop.f32.mrb[6].mxu1  ;;  %v675_v1 = vpop.f32.mrb[8].mxu0 }
 0x1e2   : > { %v603_v2 = vpop.f32.mrb[7].mxu1  ;;  %v677_v3 = vpop.f32.mrb[9].mxu0  ;;  %v1115_v9 = vmul.f32 %v601_v63, %v601_v63  ;;  %v1116_v13 = vmul.f32 %v675_v1, %v675_v1 }
 0x1e6   : > { %v749_v4 = vpop.f32.mrb[8].mxu1 }
 0x1e7   : > { %v823_v5 = vpop.f32.mrb[10].mxu0  ;;  %v751_v6 = vpop.f32.mrb[9].mxu1  ;;  %v1117_v19 = vmul.f32 %v749_v4, %v749_v4 }
 0x1e8   : > { %v825_v7 = vpop.f32.mrb[11].mxu0  ;;  %v1118_v23 = vmul.f32 %v823_v5, %v823_v5 }
 0x1ea   : > { %v895_v8 = vpop.f32.mrb[10].mxu1 }
 0x1eb   : > { %v1119_v10 = vmul.f32 %v895_v8, %v895_v8  ;;  %v967_v11 = vpop.f32.mrb[12].mxu0  ;;  %v897_v12 = vpop.f32.mrb[11].mxu1 }
 0x1ec   : > { %v1120_v14 = vmul.f32 %v967_v11, %v967_v11  ;;  %v969_v15 = vpop.f32.mrb[13].mxu0 }
 0x1ed   : > { %v1123_v16 = vadd.f32 %v1119_v10, %v1115_v9 }
 0x1ee   : > { %v1124_v17 = vadd.f32 %v1120_v14, %v1116_v13  ;;  %v1039_v18 = vpop.f32.mrb[12].mxu1 }
 0x1ef   : > { %v1121_v20 = vmul.f32 %v1039_v18, %v1039_v18  ;;  %v1111_v21 = vpop.f32.mrb[14].mxu0  ;;  %v1041_v22 = vpop.f32.mrb[13].mxu1  ;;  %1699 = vrsqrt.f32 %v1123_v16  ;;  %vm1129_vm2 = vcmp.eq.f32.partialorder %v1123_v16, inf  ;;  %v1132_v31 = vand.u32 2147483648, %v1123_v16 }
 0x1f0   : > { %v1122_v24 = vmul.f32 %v1111_v21, %v1111_v21  ;;  %v1113_v25 = vpop.f32.mrb[15].mxu0  ;;  %1701 = vrsqrt.f32 %v1124_v17  ;;  %vm1131_vm4 = vcmp.eq.f32.partialorder %v1123_v16, 0.0  ;;  %vm1136_vm5 = vcmp.eq.f32.partialorder %v1124_v17, inf }
 0x1f1   : > { %v1125_v26 = vadd.f32 %v1121_v20, %v1117_v19  ;;  %v1139_v37 = vand.u32 2147483648, %v1124_v17  ;;  %vm1138_vm6 = vcmp.eq.f32.partialorder %v1124_v17, 0.0  ;;  %v518_v19 = vcombine.high %v1855_v50, %v1855_v50 }
 0x1f2   : > { %v1126_v27 = vadd.f32 %v1122_v24, %v1118_v23 }
 0x1f3   : > { %1703 = vrsqrt.f32 %v1125_v26  ;;  %vm1143_vm7 = vcmp.eq.f32.partialorder %v1125_v26, inf  ;;  %v1146_v42 = vand.u32 2147483648, %v1125_v26  ;;  %vm1145_vm8 = vcmp.eq.f32.partialorder %v1125_v26, 0.0 }
 0x1f4   : > { %1705 = vrsqrt.f32 %v1126_v27  ;;  %vm1150_vm9 = vcmp.eq.f32.partialorder %v1126_v27, inf  ;;  %v1153_v47 = vand.u32 2147483648, %v1126_v27  ;;  %vm1152_vm10 = vcmp.eq.f32.partialorder %v1126_v27, 0.0 }
 0x1f9   : > { %v1700_v28 = vpop.eup %1699 }
 0x1fa   : > { %v1702_v29 = vpop.eup %1701  ;;  %v1128_v30 = vmul.f32 %v1700_v28, %v1123_v16 }
 0x1fb   : > { %v1135_v32 = vmul.f32 %v1702_v29, %v1124_v17 }
 0x1fc   : > { %v1130_v33 = vsel %vm1129_vm2, %v1123_v16, %v1128_v30 }
 0x1fd   : > { %v1704_v34 = vpop.eup %1703  ;;  %v1133_v35 = vsel %vm1131_vm4, %v1132_v31, %v1130_v33  ;;  %v1137_v36 = vsel %vm1136_vm5, %v1124_v17, %v1135_v32 }
 0x1fe   : > { %v1706_v38 = vpop.eup %1705  ;;  %v1156_v39 = vsel %vm1155_vm3, %v1133_v35, -inf  ;;  %v1142_v40 = vmul.f32 %v1704_v34, %v1125_v26  ;;  %v1140_v41 = vsel %vm1138_vm6, %v1139_v37, %v1137_v36 }
 0x1ff   : > { %1157 = vmax.xlane.f32.xlu0 %v1156_v39  ;;  %v1149_v43 = vmul.f32 %v1706_v38, %v1126_v27  ;;  %v1159_v48 = vsel %vm1155_vm3, %v1140_v41, -inf }
 0x200   : > { %v1144_v44 = vsel %vm1143_vm7, %v1125_v26, %v1142_v40 }
 0x201   : > { %v1147_v45 = vsel %vm1145_vm8, %v1146_v42, %v1144_v44  ;;  %v1151_v46 = vsel %vm1150_vm9, %v1126_v27, %v1149_v43 }
 0x202   : > { %v1162_v49 = vsel %vm1155_vm3, %v1147_v45, -inf  ;;  %v1154_v51 = vsel %vm1152_vm10, %v1153_v47, %v1151_v46 }
 0x203   : > { %1160 = vmax.xlane.f32.xlu0 %v1159_v48  ;;  %1163 = vmax.xlane.f32.xlu1 %v1162_v49  ;;  %v1165_v52 = vsel %vm1155_vm3, %v1154_v51, -inf }
 0x207   : > { %1166 = vmax.xlane.f32.xlu1 %v1165_v52 }
 0x28c   : > { %v1158_v53 = vpop.xlane.xlu0 %1157 }
 0x28d   : > { %v1168_v54 = vsub.f32 %v1133_v35, %v1158_v53 }
 0x28f   : > { %v1172_v55 = vmul.f32 1.442695, %v1168_v54 }
 0x290   : > { %v1161_v56 = vpop.xlane.xlu0 %1160  ;;  %v1164_v57 = vpop.xlane.xlu1 %1163 }
 0x291   : > { %1707 = vpow2.f32 %v1172_v55  ;;  %v1169_v58 = vsub.f32 %v1140_v41, %v1161_v56  ;;  %v1170_v59 = vsub.f32 %v1147_v45, %v1164_v57 }
 0x293   : > { %v1174_v60 = vmul.f32 1.442695, %v1169_v58  ;;  %v1176_v61 = vmul.f32 1.442695, %v1170_v59 }
 0x294   : > { %v1167_v62 = vpop.xlane.xlu1 %1166 }
 0x295   : > { %1709 = vpow2.f32 %v1174_v60  ;;  %v1171_v63 = vsub.f32 %v1154_v51, %v1167_v62 }
 0x296   : > { %1711 = vpow2.f32 %v1176_v61 }
 0x297   : > { %v1178_v1 = vmul.f32 1.442695, %v1171_v63 }
 0x299   : > { %1713 = vpow2.f32 %v1178_v1 }
 0x29b   : > { %v1708_v2 = vpop.eup %1707 }
 0x29c   : > { %v1180_v3 = vsel %vm1155_vm3, %v1708_v2, 0.0 }
 0x29d   : > { %1181 = vadd.xlane.f32.xlu0 %v1180_v3 }
 0x29f   : > { %v1710_v4 = vpop.eup %1709 }
 0x2a0   : > { %v1712_v5 = vpop.eup %1711  ;;  %v1183_v6 = vsel %vm1155_vm3, %v1710_v4, 0.0 }
 0x2a1   : > { %1184 = vadd.xlane.f32.xlu1 %v1183_v6  ;;  %v1186_v7 = vsel %vm1155_vm3, %v1712_v5, 0.0 }
 0x2a2   : > { %1187 = vadd.xlane.f32.xlu0 %v1186_v7 }
 0x2a3   : > { %v1714_v8 = vpop.eup %1713 }
 0x2a4   : > { %v1189_v9 = vsel %vm1155_vm3, %v1714_v8, 0.0 }
 0x2a5   : > { %1190 = vadd.xlane.f32.xlu1 %v1189_v9 }
 0x32a   : > { %v1182_v10 = vpop.xlane.xlu0 %1181 }
 0x32b   : > { %1715 = vrcp.f32 %v1182_v10 }
 0x32e   : > { %v1185_v11 = vpop.xlane.xlu1 %1184 }
 0x32f   : > { %v1188_v12 = vpop.xlane.xlu0 %1187  ;;  %1717 = vrcp.f32 %v1185_v11 }
 0x330   : > { %1719 = vrcp.f32 %v1188_v12 }
 0x332   : > { %v1191_v13 = vpop.xlane.xlu1 %1190 }
 0x333   : > { %1721 = vrcp.f32 %v1191_v13 }
 0x335   : > { %v1716_v14 = vpop.eup %1715 }
 0x336   : > { %v1196_v15 = vmul.f32 %v1716_v14, %v1708_v2 }
 0x338   : > { %1643 = vmatmul.mubr.msk.f32.vlgmr.msra.gmra.mrb[14].mxu1 %vm1200_vm12, %v1196_v15 }
 0x339   : > { %v1718_v16 = vpop.eup %1717  ;;  %1651 = vmatpush3.msk.msra.mxu1 %vm1204_vm1, %v1855_v50  ;;  %1652 = vmatprep.mubr.msk.f32.mxu1 %vm1767_vm11, %v1766_v0 }
 0x33a   : > { %v1720_v17 = vpop.eup %1719  ;;  %v1197_v18 = vmul.f32 %v1718_v16, %v1710_v4 }
 0x33b   : > { %v1198_v20 = vmul.f32 %v1720_v17, %v1712_v5 }
 0x33c   : > { %1648 = vmatmul.mubr.msk.f32.vlgmr.msra.gmra.mrb[16].mxu0 %vm1200_vm12, %v1197_v18 }
 0x33d   : > { %v1722_v21 = vpop.eup %1721  ;;  %1653 = vmatmul.mubr.msk.f32.vlgmr.msra.gmra.mrb[16].mxu1 %vm1200_vm12, %v1198_v20  ;;  %1656 = vmatpush3.msk.msra.mxu0 %vm1204_vm1, %v518_v19 }
 0x33e   : > { %v1199_v22 = vmul.f32 %v1722_v21, %v1714_v8  ;;  %1657 = vmatprep.mubr.msk.f32.mxu0 %vm1767_vm11, %v1766_v0 }
 0x340   : > { %1658 = vmatmul.mubr.msk.f32.vlgmr.msra.gmra.mrb[18].mxu0 %vm1200_vm12, %v1199_v22 }
 0x40b   : > { %v1273_v23 = vpop.f32.mrb[14].mxu1 }
 0x40c   : > { %v1644_v24 = vpop.f32.mrb[15].mxu1 }
 0x40f   : > { %v1348_v50 = vpop.f32.mrb[16].mxu0 }
 0x410   : > { %v1506_v25 = vcombine.low %v1273_v23, %v1348_v50  ;;  %v1423_v26 = vpop.f32.mrb[16].mxu1  ;;  %v1649_v27 = vpop.f32.mrb[17].mxu0 }
 0x411   : > { %v1654_v28 = vpop.f32.mrb[17].mxu1 }
 0x412   : > { %1510 = vst.msk [vmem:[%s160_s7] sm:$0xff] %vm178_vm0, %v1506_v25 }
 0x413   : > { %v1498_v29 = vpop.f32.mrb[18].mxu0 }
 0x414   : > { %v1507_v30 = vcombine.low %v1423_v26, %v1498_v29  ;;  %v1659_v31 = vpop.f32.mrb[19].mxu0 }
 0x416   : > { %1511 = vst.msk [vmem:[%s160_s7 + $0x8] sm:$0xff] %vm178_vm0, %v1507_v30 }
 0x417 PF: > { %s13_s9 = sadd.s32 1, %s1761_s9  }
 0x418   : > { %p10_p3 = scmp.ge.s32.totalorder %s13_s9, 4  }
 0x41a   :  { %12 = sbr.rel (!%p10_p3) target bundleno = 1 (0x1), region = 63 }
 0x421   :  { %1534 = vsyncpa [#allocation3], 1 }
 0x422   :  { %1536 = vsyncpa [#allocation3 + $0x1], 1 }

</bundles_post_ra>
